<compile_context>
chip_gen: v7x
topology: tpu7x:2x2x1
jax: 0.10.0
libtpu: 0.0.40
codegen_flags: <defaults>
</compile_context>

<pallas_src>
import jax
import jax.numpy as jnp
from jax.experimental import pallas as pl
from jax.experimental.pallas import tpu as pltpu


def _polytope_kernel(x_ref, w_ref, b_ref, o_ref):
    # z = (-X) @ W + b  ==  b - X @ W   (negation folded past the matmul).
    z = b_ref[...] - jnp.dot(
        x_ref[...], w_ref[...], preferred_element_type=jnp.float32
    )
    # Numerically stable log-sigmoid: min(z, 0) - log1p(exp(-|z|)).
    # exp(-|z|) <= 1 always, so no overflow even for junk rows in a ragged tile.
    ls = jnp.minimum(z, 0.0) - jnp.log1p(jnp.exp(-jnp.abs(z)))
    # Mean over the K (polytope sides) axis -> (block_b, 1).
    o_ref[...] = jnp.mean(ls, axis=1, keepdims=True).astype(o_ref.dtype)


def polytope_lambda(x, weight_t, bias, *, block_b=512, vmem_limit_bytes=None):
    """x: (..., F) f32, weight_t: (F, K) f32 (= W.T), bias: (1, K) f32 -> (B, 1).

    block_b: rows of X per grid step.  512 fits every chip's default scoped
             VMEM; raise together with vmem_limit_bytes (e.g. 1024-2048 on
             v6e, cap ~1024 on v7x, keep <=512 on v5e unless the limit is
             raised).
    """
    F, K = weight_t.shape
    x = x.reshape(-1, F)                       # X.view(-1, num_features)
    B = x.shape[0]
    assert bias.shape == (1, K)

    # Sublane-aligned row tile; don't over-allocate for tiny batches.  The
    # ragged last tile (B % bm != 0) is handled by Pallas: OOB input rows hold
    # unspecified data, their per-row outputs are discarded on writeback, so
    # no HBM-copying jnp.pad of X is needed.
    bm = max(8, min(block_b, ((B + 7) // 8) * 8))
    bm = ((bm + 7) // 8) * 8
    grid_b = pl.cdiv(B, bm)

    cost = pl.CostEstimate(
        flops=2 * B * F * K,
        transcendentals=2 * B * K,               # exp + log1p per z element
        bytes_accessed=(B * F + F * K + K + B) * 4,
    )

    out = pl.pallas_call(
        _polytope_kernel,
        out_shape=jax.ShapeDtypeStruct((B, 1), jnp.float32),
        grid_spec=pltpu.PrefetchScalarGridSpec(
            num_scalar_prefetch=0,
            grid=(grid_b,),
            in_specs=[
                pl.BlockSpec((bm, F), lambda i: (i, 0)),    # X tile (streamed)
                pl.BlockSpec((F, K), lambda i: (0, 0)),     # W.T, VMEM-resident
                pl.BlockSpec((1, K), lambda i: (0, 0)),     # bias row, resident
            ],
            out_specs=pl.BlockSpec((bm, 1), lambda i: (i, 0)),
        ),
        compiler_params=pltpu.CompilerParams(
            dimension_semantics=("parallel",),   # shards the B loop across TCs on v7x
            vmem_limit_bytes=vmem_limit_bytes,
        ),
        cost_estimate=cost,
    )(x, weight_t, bias)

    return out


def _reference(x, weight_t, bias):
    x = x.reshape(-1, weight_t.shape[0])
    z = bias - x @ weight_t
    ls = jnp.minimum(z, 0.0) - jnp.log1p(jnp.exp(-jnp.abs(z)))
    return jnp.mean(ls, axis=1, keepdims=True)


if __name__ == "__main__":
    # Module defaults: polytope_sides (K) = 30, num_features (F) = 2052.
    K = 30
    F = 2052
    B = 20  # deliberately NOT a multiple of 8 / block_b -> exercises ragged tile

    key = jax.random.PRNGKey(0)
    kx, kw, kb = jax.random.split(key, 3)

    x = jax.random.normal(kx, (B, F), dtype=jnp.float32)

    # Deterministic parameter init, PyTorch-Linear-style uniform(+-1/sqrt(fan_in)).
    bound = 1.0 / jnp.sqrt(jnp.float32(F))
    weight_t = jax.random.uniform(kw, (F, K), dtype=jnp.float32,
                                  minval=-bound, maxval=bound)  # stored as W.T
    bias = jax.random.uniform(kb, (1, K), dtype=jnp.float32,
                              minval=-bound, maxval=bound)

    out = jax.block_until_ready(polytope_lambda(x, weight_t, bias))
    ref = _reference(x, weight_t, bias)
    assert out.shape == (B, 1)
    assert jnp.allclose(out, ref, atol=1e-5, rtol=1e-5), "mismatch vs reference (B=20)"

    # Multi-tile + ragged-edge path (2 grid steps, last tile partially OOB).
    B2 = 1000
    x2 = jax.random.normal(jax.random.PRNGKey(1), (B2, F), dtype=jnp.float32)
    out2 = jax.block_until_ready(polytope_lambda(x2, weight_t, bias))
    ref2 = _reference(x2, weight_t, bias)
    assert out2.shape == (B2, 1)
    assert jnp.allclose(out2, ref2, atol=1e-5, rtol=1e-5), "mismatch vs reference (B=1000)"

    print("KERNEL_OK")
</pallas_src>

<mosaic_0001>
module attributes {stable_mosaic.version = 11 : i64} {
  func.func @_polytope_kernel(%arg0: i32, %arg1: memref<24x2052xf32, #tpu.memory_space<vmem>>, %arg2: memref<2052x30xf32, #tpu.memory_space<vmem>>, %arg3: memref<1x30xf32, #tpu.memory_space<vmem>>, %arg4: memref<24x1xf32, #tpu.memory_space<vmem>>) attributes {dimension_semantics = [#tpu.dimension_semantics<parallel>], iteration_bounds = array<i64: 1>, scalar_prefetch = 0 : i64, scratch_operands = 0 : i64, tpu.core_type = #tpu.core_type<tc>, window_params = [{transform_indices = @transform_0, window_bounds = array<i64: 24, 2052>}, {pipeline_mode = #tpu.pipeline_mode<synchronous>, transform_indices = @transform_1, window_bounds = array<i64: 2052, 30>}, {pipeline_mode = #tpu.pipeline_mode<synchronous>, transform_indices = @transform_2, window_bounds = array<i64: 1, 30>}, {transform_indices = @transform_3, window_bounds = array<i64: 24, 1>}]} {
    %c0 = arith.constant 0 : index
    %c0_0 = arith.constant 0 : index
    %0 = vector.load %arg3[%c0, %c0_0] : memref<1x30xf32, #tpu.memory_space<vmem>>, vector<1x30xf32>
    %c0_1 = arith.constant 0 : index
    %c0_2 = arith.constant 0 : index
    %1 = vector.load %arg1[%c0_1, %c0_2] : memref<24x2052xf32, #tpu.memory_space<vmem>>, vector<24x2052xf32>
    %c0_3 = arith.constant 0 : index
    %c0_4 = arith.constant 0 : index
    %2 = vector.load %arg2[%c0_3, %c0_4] : memref<2052x30xf32, #tpu.memory_space<vmem>>, vector<2052x30xf32>
    %cst = arith.constant dense<0.000000e+00> : vector<24x30xf32>
    %3 = tpu.matmul %1, %2, %cst {dimension_numbers = #tpu.dot_dimension_numbers<[1], [0], [0], [1], [0, 0, 1, 1], [], []>} : vector<24x2052xf32>, vector<2052x30xf32>, vector<24x30xf32> -> vector<24x30xf32>
    %4 = vector.broadcast %0 : vector<1x30xf32> to vector<24x30xf32>
    %5 = arith.subf %4, %3 : vector<24x30xf32>
    %cst_5 = arith.constant 0.000000e+00 : f32
    %6 = vector.broadcast %cst_5 : f32 to vector<24x30xf32>
    %7 = arith.minimumf %5, %6 : vector<24x30xf32>
    %8 = math.absf %5 : vector<24x30xf32>
    %cst_6 = arith.constant 0.000000e+00 : f32
    %9 = vector.broadcast %cst_6 : f32 to vector<24x30xf32>
    %10 = arith.subf %9, %8 : vector<24x30xf32>
    %11 = math.exp %10 : vector<24x30xf32>
    %12 = math.log1p %11 : vector<24x30xf32>
    %13 = arith.subf %7, %12 : vector<24x30xf32>
    %cst_7 = arith.constant dense<0.000000e+00> : vector<24xf32>
    %14 = vector.multi_reduction <add>, %13, %cst_7 [1] : vector<24x30xf32> to vector<24xf32>
    %15 = vector.shape_cast %14 : vector<24xf32> to vector<24x1xf32>
    %cst_8 = arith.constant 3.000000e+01 : f32
    %16 = vector.broadcast %cst_8 : f32 to vector<24x1xf32>
    %17 = arith.divf %15, %16 : vector<24x1xf32>
    %c0_9 = arith.constant 0 : index
    %c0_10 = arith.constant 0 : index
    %18 = vector.load %arg4[%c0_9, %c0_10] : memref<24x1xf32, #tpu.memory_space<vmem>>, vector<24x1xf32>
    tpu.vector_store %arg4[%c0_9, %c0_10], %17 {strides = array<i32>} : memref<24x1xf32, #tpu.memory_space<vmem>>, vector<24x1xf32>,
    return
  }
  func.func @transform_0(%arg0: i32) -> (i32, i32) {
    %c0_i32 = arith.constant 0 : i32
    %c0_i32_0 = arith.constant 0 : i32
    return %arg0, %c0_i32 : i32, i32
  }
  func.func @transform_1(%arg0: i32) -> (i32, i32) {
    %c0_i32 = arith.constant 0 : i32
    %c0_i32_0 = arith.constant 0 : i32
    %c0_i32_1 = arith.constant 0 : i32
    return %c0_i32, %c0_i32_0 : i32, i32
  }
  func.func @transform_2(%arg0: i32) -> (i32, i32) {
    %c0_i32 = arith.constant 0 : i32
    %c0_i32_0 = arith.constant 0 : i32
    %c0_i32_1 = arith.constant 0 : i32
    return %c0_i32, %c0_i32_0 : i32, i32
  }
  func.func @transform_3(%arg0: i32) -> (i32, i32) {
    %c0_i32 = arith.constant 0 : i32
    %c0_i32_0 = arith.constant 0 : i32
    return %arg0, %c0_i32 : i32, i32
  }
}

</mosaic_0001>

<bundles_post_ra>
// kernel: tpu_custom_call.1
= control target key start
LH: loop header
LB: loop body
LE: loop exit
PB: predicated region body
PF: predicated region fallthrough
CT: control target
= control target key end

     0   :  { %vm333_vm0 = vcmask 1043456   ;;  %vm1754_vm1 = vmmov 0   ;;  %vm323_vm2 = vcmask 31744   ;;  %vm1111_vm4 = vcmask 244736   ;;  %s2714_s1 = inlined_call_operand.vmem [shape: f32[2052,30], index: 1, kind: input, shape index: {}]   ;;  %s2715_s0 = inlined_call_operand.vmem [shape: f32[20,2052], index: 0, kind: input, shape index: {}]   ;;  %s2716_s2 = inlined_call_operand.vmem [shape: f32[1,30], index: 2, kind: input, shape index: {}]   ;;  %s2717_s3 = inlined_call_operand.vmem [shape: f32[20,1], index: 3, kind: output, shape index: {}]  }
   0x1   :  { %v82_v0 = vld [vmem:[%s2714_s1 + $0x80] sm:$0xff]  ;;  %v83_v1 = vld [vmem:[%s2714_s1 + $0x88] sm:$0xff]  ;;  %v84_v11 = vld [vmem:[%s2714_s1 + $0x90] sm:$0xff]  ;;  %vm1125_vm7 = vcmask 7168  }
   0x2   :  { %v114_v2 = vld [vmem:[%s2714_s1 + $0x180] sm:$0xff]  ;;  %v1481_v3 = vpack.c.bf16 %v83_v1, %v82_v0  ;;  %v115_v4 = vld [vmem:[%s2714_s1 + $0x188] sm:$0xff]  ;;  %v85_v13 = vld [vmem:[%s2714_s1 + $0x98] sm:$0xff] }
   0x3   :  { %v66_v5 = vld [vmem:[%s2714_s1] sm:$0xff]  ;;  %v67_v6 = vld [vmem:[%s2714_s1 + $0x8] sm:$0xff]  ;;  %v1513_v7 = vpack.c.bf16 %v115_v4, %v114_v2  ;;  %v116_v14 = vld [vmem:[%s2714_s1 + $0x190] sm:$0xff]  ;;  %v1485_v16 = vpack.c.bf16 %v85_v13, %v84_v11 }
   0x4   :  { %v1483_v8 = vpack.c.bf16 %v67_v6, %v66_v5  ;;  %v98_v9 = vld [vmem:[%s2714_s1 + $0x100] sm:$0xff]  ;;  %v99_v10 = vld [vmem:[%s2714_s1 + $0x108] sm:$0xff]  ;;  %1482 = vmatprep.subr.bf16.mxu0 %v1481_v3  ;;  %v117_v15 = vld [vmem:[%s2714_s1 + $0x198] sm:$0xff] }
   0x5   :  { %v1515_v12 = vpack.c.bf16 %v99_v10, %v98_v9  ;;  %1514 = vmatprep.subr.bf16.mxu1 %v1513_v7  ;;  %v1517_v17 = vpack.c.bf16 %v117_v15, %v116_v14  ;;  %v68_v18 = vld [vmem:[%s2714_s1 + $0x10] sm:$0xff]  ;;  %v69_v19 = vld [vmem:[%s2714_s1 + $0x18] sm:$0xff]  ;;  %v86_v23 = vld [vmem:[%s2714_s1 + $0xa0] sm:$0xff] }
   0x6   :  { %1484 = vmatpush3.bf16.msra.mxu0 %v1483_v8  ;;  %v100_v20 = vld [vmem:[%s2714_s1 + $0x110] sm:$0xff]  ;;  %v1487_v21 = vpack.c.bf16 %v69_v19, %v68_v18  ;;  %v101_v22 = vld [vmem:[%s2714_s1 + $0x118] sm:$0xff]  ;;  %v87_v24 = vld [vmem:[%s2714_s1 + $0xa8] sm:$0xff] }
   0x7   :  { %1516 = vmatpush3.bf16.msra.mxu1 %v1515_v12  ;;  %1486 = vmatprep.subr.bf16.mxu0 %v1485_v16  ;;  %v1519_v25 = vpack.c.bf16 %v101_v22, %v100_v20  ;;  %v1489_v26 = vpack.c.bf16 %v87_v24, %v86_v23  ;;  %v118_v27 = vld [vmem:[%s2714_s1 + $0x1a0] sm:$0xff]  ;;  %v119_v28 = vld [vmem:[%s2714_s1 + $0x1a8] sm:$0xff]  ;;  %v88_v35 = vld [vmem:[%s2714_s1 + $0xb0] sm:$0xff] }
   0x8   :  { %1518 = vmatprep.subr.bf16.mxu1 %v1517_v17  ;;  %v70_v29 = vld [vmem:[%s2714_s1 + $0x20] sm:$0xff]  ;;  %v1521_v30 = vpack.c.bf16 %v119_v28, %v118_v27  ;;  %v71_v31 = vld [vmem:[%s2714_s1 + $0x28] sm:$0xff]  ;;  %v89_v36 = vld [vmem:[%s2714_s1 + $0xb8] sm:$0xff] }
   0x9   :  { %v102_v32 = vld [vmem:[%s2714_s1 + $0x120] sm:$0xff]  ;;  %v103_v33 = vld [vmem:[%s2714_s1 + $0x128] sm:$0xff]  ;;  %v1491_v34 = vpack.c.bf16 %v71_v31, %v70_v29  ;;  %v120_v37 = vld [vmem:[%s2714_s1 + $0x1b0] sm:$0xff]  ;;  %v1493_v39 = vpack.c.bf16 %v89_v36, %v88_v35 }
   0xa   :  { %1488 = vmatpush3.bf16.msra.mxu0 %v1487_v21  ;;  %v1523_v38 = vpack.c.bf16 %v103_v33, %v102_v32  ;;  %v121_v40 = vld [vmem:[%s2714_s1 + $0x1b8] sm:$0xff]  ;;  %v72_v41 = vld [vmem:[%s2714_s1 + $0x30] sm:$0xff]  ;;  %v90_v46 = vld [vmem:[%s2714_s1 + $0xc0] sm:$0xff] }
   0xb   :  { %1520 = vmatpush3.bf16.msra.mxu1 %v1519_v25  ;;  %1490 = vmatprep.subr.bf16.mxu0 %v1489_v26  ;;  %v73_v42 = vld [vmem:[%s2714_s1 + $0x38] sm:$0xff]  ;;  %v1525_v43 = vpack.c.bf16 %v121_v40, %v120_v37  ;;  %v104_v44 = vld [vmem:[%s2714_s1 + $0x130] sm:$0xff]  ;;  %v91_v47 = vld [vmem:[%s2714_s1 + $0xc8] sm:$0xff] }
   0xc   :  { %1522 = vmatprep.subr.bf16.mxu1 %v1521_v30  ;;  %v105_v45 = vld [vmem:[%s2714_s1 + $0x138] sm:$0xff]  ;;  %v122_v48 = vld [vmem:[%s2714_s1 + $0x1c0] sm:$0xff]  ;;  %v123_v49 = vld [vmem:[%s2714_s1 + $0x1c8] sm:$0xff]  ;;  %v1495_v50 = vpack.c.bf16 %v73_v42, %v72_v41  ;;  %v1497_v52 = vpack.c.bf16 %v91_v47, %v90_v46 }
   0xd   :  { %v1527_v51 = vpack.c.bf16 %v105_v45, %v104_v44  ;;  %v74_v53 = vld [vmem:[%s2714_s1 + $0x40] sm:$0xff]  ;;  %v75_v54 = vld [vmem:[%s2714_s1 + $0x48] sm:$0xff]  ;;  %v1529_v56 = vpack.c.bf16 %v123_v49, %v122_v48  ;;  %v92_v58 = vld [vmem:[%s2714_s1 + $0xd0] sm:$0xff] }
   0xe   :  { %1492 = vmatpush3.bf16.msra.mxu0 %v1491_v34  ;;  %v106_v55 = vld [vmem:[%s2714_s1 + $0x140] sm:$0xff]  ;;  %v107_v57 = vld [vmem:[%s2714_s1 + $0x148] sm:$0xff]  ;;  %v93_v59 = vld [vmem:[%s2714_s1 + $0xd8] sm:$0xff]  ;;  %v1499_v62 = vpack.c.bf16 %v75_v54, %v74_v53 }
   0xf   :  { %1524 = vmatpush3.bf16.msra.mxu1 %v1523_v38  ;;  %1494 = vmatprep.subr.bf16.mxu0 %v1493_v39  ;;  %v124_v60 = vld [vmem:[%s2714_s1 + $0x1d0] sm:$0xff]  ;;  %v125_v61 = vld [vmem:[%s2714_s1 + $0x1d8] sm:$0xff]  ;;  %v1531_v63 = vpack.c.bf16 %v107_v57, %v106_v55  ;;  %v1501_v0 = vpack.c.bf16 %v93_v59, %v92_v58  ;;  %v94_v6 = vld [vmem:[%s2714_s1 + $0xe0] sm:$0xff] }
  0x10   :  { %1526 = vmatprep.subr.bf16.mxu1 %v1525_v43  ;;  %v76_v1 = vld [vmem:[%s2714_s1 + $0x50] sm:$0xff]  ;;  %v77_v2 = vld [vmem:[%s2714_s1 + $0x58] sm:$0xff]  ;;  %v1533_v4 = vpack.c.bf16 %v125_v61, %v124_v60  ;;  %v95_v7 = vld [vmem:[%s2714_s1 + $0xe8] sm:$0xff] }
  0x11   :  { %v108_v3 = vld [vmem:[%s2714_s1 + $0x150] sm:$0xff]  ;;  %v109_v5 = vld [vmem:[%s2714_s1 + $0x158] sm:$0xff]  ;;  %v126_v8 = vld [vmem:[%s2714_s1 + $0x1e0] sm:$0xff]  ;;  %v1503_v10 = vpack.c.bf16 %v77_v2, %v76_v1  ;;  %v1505_v14 = vpack.c.bf16 %v95_v7, %v94_v6 }
  0x12   :  { %1496 = vmatpush3.bf16.msra.mxu0 %v1495_v50  ;;  %v127_v9 = vld [vmem:[%s2714_s1 + $0x1e8] sm:$0xff]  ;;  %v78_v11 = vld [vmem:[%s2714_s1 + $0x60] sm:$0xff]  ;;  %v1535_v13 = vpack.c.bf16 %v109_v5, %v108_v3  ;;  %v18_v17 = vld [vmem:[%s2715_s0 + $0x18] sm:$0xff] }
  0x13   :  { %1528 = vmatpush3.bf16.msra.mxu1 %v1527_v51  ;;  %1498 = vmatprep.subr.bf16.mxu0 %v1497_v52  ;;  %v79_v12 = vld [vmem:[%s2714_s1 + $0x68] sm:$0xff]  ;;  %v110_v15 = vld [vmem:[%s2714_s1 + $0x160] sm:$0xff]  ;;  %v1537_v18 = vpack.c.bf16 %v127_v9, %v126_v8  ;;  %v96_v20 = vld [vmem:[%s2714_s1 + $0xf0] sm:$0xff] }
  0x14   :  { %1530 = vmatprep.subr.bf16.mxu1 %v1529_v56  ;;  %v16_v16 = vld [vmem:[%s2715_s0 + $0x8] sm:$0xff]  ;;  %v97_v21 = vld [vmem:[%s2714_s1 + $0xf8] sm:$0xff]  ;;  %v128_v22 = vld [vmem:[%s2714_s1 + $0x1f0] sm:$0xff]  ;;  %481 = vmatprep.mubr.f32.mxu1 %v18_v17  ;;  %v1507_v24 = vpack.c.bf16 %v79_v12, %v78_v11 }
  0x15   :  { %v111_v19 = vld [vmem:[%s2714_s1 + $0x168] sm:$0xff]  ;;  %401 = vmatprep.mubr.f32.mxu0 %v16_v16  ;;  %v129_v23 = vld [vmem:[%s2714_s1 + $0x1f8] sm:$0xff]  ;;  %v1509_v26 = vpack.c.bf16 %v97_v21, %v96_v20  ;;  %v80_v27 = vld [vmem:[%s2714_s1 + $0x70] sm:$0xff] }
  0x16   :  { %1500 = vmatpush3.bf16.msra.mxu0 %v1499_v62  ;;  %v1539_v25 = vpack.c.bf16 %v111_v19, %v110_v15  ;;  %v81_v28 = vld [vmem:[%s2714_s1 + $0x78] sm:$0xff]  ;;  %v112_v29 = vld [vmem:[%s2714_s1 + $0x170] sm:$0xff]  ;;  %v1541_v30 = vpack.c.bf16 %v129_v23, %v128_v22  ;;  %v146_v32 = vld [vmem:[%s2714_s1 + $0x280] sm:$0xff] }
  0x17   :  { %1532 = vmatpush3.bf16.msra.mxu1 %v1531_v63  ;;  %1502 = vmatprep.subr.bf16.mxu0 %v1501_v0  ;;  %v113_v31 = vld [vmem:[%s2714_s1 + $0x178] sm:$0xff]  ;;  %v147_v33 = vld [vmem:[%s2714_s1 + $0x288] sm:$0xff]  ;;  %v178_v34 = vld [vmem:[%s2714_s1 + $0x380] sm:$0xff]  ;;  %v1511_v36 = vpack.c.bf16 %v81_v28, %v80_v27 }
  0x18   :  { %1534 = vmatprep.subr.bf16.mxu1 %v1533_v4  ;;  %v179_v35 = vld [vmem:[%s2714_s1 + $0x388] sm:$0xff]  ;;  %v1543_v37 = vpack.c.bf16 %v113_v31, %v112_v29  ;;  %v1545_v38 = vpack.c.bf16 %v147_v33, %v146_v32  ;;  %v130_v39 = vld [vmem:[%s2714_s1 + $0x200] sm:$0xff]  ;;  %v148_v44 = vld [vmem:[%s2714_s1 + $0x290] sm:$0xff] }
  0x19   :  { %v131_v40 = vld [vmem:[%s2714_s1 + $0x208] sm:$0xff]  ;;  %v162_v41 = vld [vmem:[%s2714_s1 + $0x300] sm:$0xff]  ;;  %v1577_v42 = vpack.c.bf16 %v179_v35, %v178_v34  ;;  %v149_v45 = vld [vmem:[%s2714_s1 + $0x298] sm:$0xff] }
  0x1a   :  { %1504 = vmatpush3.bf16.msra.mxu0 %v1503_v10  ;;  %v163_v43 = vld [vmem:[%s2714_s1 + $0x308] sm:$0xff]  ;;  %v180_v46 = vld [vmem:[%s2714_s1 + $0x390] sm:$0xff]  ;;  %v181_v47 = vld [vmem:[%s2714_s1 + $0x398] sm:$0xff]  ;;  %v1547_v50 = vpack.c.bf16 %v131_v40, %v130_v39  ;;  %v1549_v52 = vpack.c.bf16 %v149_v45, %v148_v44 }
  0x1b   :  { %1536 = vmatpush3.bf16.msra.mxu1 %v1535_v13  ;;  %1506 = vmatprep.subr.bf16.mxu0 %v1505_v14  ;;  %v15_v48 = vld [vmem:[%s2715_s0] sm:$0xff]  ;;  %v17_v49 = vld [vmem:[%s2715_s0 + $0x10] sm:$0xff]  ;;  %v1579_v51 = vpack.c.bf16 %v163_v43, %v162_v41  ;;  %v133_v54 = vld [vmem:[%s2714_s1 + $0x218] sm:$0xff]  ;;  %v1581_v56 = vpack.c.bf16 %v181_v47, %v180_v46 }
  0x1c   :  { %1538 = vmatprep.subr.bf16.mxu1 %v1537_v18  ;;  %v132_v53 = vld [vmem:[%s2714_s1 + $0x210] sm:$0xff]  ;;  %v165_v57 = vld [vmem:[%s2714_s1 + $0x318] sm:$0xff]  ;;  %v150_v58 = vld [vmem:[%s2714_s1 + $0x2a0] sm:$0xff] }
  0x1d   :  { %v164_v55 = vld [vmem:[%s2714_s1 + $0x310] sm:$0xff]  ;;  %v151_v59 = vld [vmem:[%s2714_s1 + $0x2a8] sm:$0xff]  ;;  %v182_v60 = vld [vmem:[%s2714_s1 + $0x3a0] sm:$0xff]  ;;  %v1551_v62 = vpack.c.bf16 %v133_v54, %v132_v53 }
  0x1e   :  { %1508 = vmatpush3.bf16.msra.mxu0 %v1507_v24  ;;  %v183_v61 = vld [vmem:[%s2714_s1 + $0x3a8] sm:$0xff]  ;;  %v134_v63 = vld [vmem:[%s2714_s1 + $0x220] sm:$0xff]  ;;  %v1583_v1 = vpack.c.bf16 %v165_v57, %v164_v55  ;;  %v1553_v2 = vpack.c.bf16 %v151_v59, %v150_v58  ;;  %v152_v5 = vld [vmem:[%s2714_s1 + $0x2b0] sm:$0xff] }
  0x1f   :  { %1540 = vmatpush3.bf16.msra.mxu1 %v1539_v25  ;;  %1510 = vmatprep.subr.bf16.mxu0 %v1509_v26  ;;  %v135_v0 = vld [vmem:[%s2714_s1 + $0x228] sm:$0xff]  ;;  %v166_v3 = vld [vmem:[%s2714_s1 + $0x320] sm:$0xff]  ;;  %v1585_v6 = vpack.c.bf16 %v183_v61, %v182_v60  ;;  %v153_v7 = vld [vmem:[%s2714_s1 + $0x2b8] sm:$0xff] }
  0x20   :  { %1542 = vmatprep.subr.bf16.mxu1 %v1541_v30  ;;  %v167_v4 = vld [vmem:[%s2714_s1 + $0x328] sm:$0xff]  ;;  %v184_v8 = vld [vmem:[%s2714_s1 + $0x3b0] sm:$0xff]  ;;  %v185_v10 = vld [vmem:[%s2714_s1 + $0x3b8] sm:$0xff]  ;;  %v1555_v13 = vpack.c.bf16 %v135_v0, %v134_v63  ;;  %v1557_v18 = vpack.c.bf16 %v153_v7, %v152_v5 }
  0x21   :  { %v33_v9 = vld [vmem:[%s2715_s0 + $0x90] sm:$0xff]  ;;  %v35_v11 = vld [vmem:[%s2715_s0 + $0xa0] sm:$0xff]  ;;  %v32_v12 = vld [vmem:[%s2715_s0 + $0x88] sm:$0xff]  ;;  %v1587_v17 = vpack.c.bf16 %v167_v4, %v166_v3  ;;  %v1589_v22 = vpack.c.bf16 %v185_v10, %v184_v8 }
  0x22   :  { %1512 = vmatpush3.bf16.msra.mxu0 %v1511_v36  ;;  %v136_v14 = vld [vmem:[%s2714_s1 + $0x230] sm:$0xff]  ;;  %v137_v15 = vld [vmem:[%s2714_s1 + $0x238] sm:$0xff]  ;;  %v154_v21 = vld [vmem:[%s2714_s1 + $0x2c0] sm:$0xff] }
  0x23   :  { %1544 = vmatpush3.bf16.msra.mxu1 %v1543_v37  ;;  %1546 = vmatprep.subr.bf16.mxu0 %v1545_v38  ;;  %v34_v16 = vld [vmem:[%s2715_s0 + $0x98] sm:$0xff]  ;;  %v168_v19 = vld [vmem:[%s2714_s1 + $0x330] sm:$0xff]  ;;  %v155_v23 = vld [vmem:[%s2714_s1 + $0x2c8] sm:$0xff]  ;;  %v1559_v29 = vpack.c.bf16 %v137_v15, %v136_v14 }
  0x24   :  { %1578 = vmatprep.subr.bf16.mxu1 %v1577_v42  ;;  %v169_v20 = vld [vmem:[%s2714_s1 + $0x338] sm:$0xff]  ;;  %v186_v24 = vld [vmem:[%s2714_s1 + $0x3c0] sm:$0xff]  ;;  %v187_v26 = vld [vmem:[%s2714_s1 + $0x3c8] sm:$0xff]  ;;  %v1561_v33 = vpack.c.bf16 %v155_v23, %v154_v21 }
  0x25   :  { %402 = vmatmul.mubr.f32.vlgmr.msra.gmra.mrb[0].mxu0 %v15_v48  ;;  %v50_v25 = vld [vmem:[%s2715_s0 + $0x118] sm:$0xff]  ;;  %v52_v27 = vld [vmem:[%s2715_s0 + $0x128] sm:$0xff]  ;;  %v49_v28 = vld [vmem:[%s2715_s0 + $0x110] sm:$0xff]  ;;  %v1591_v32 = vpack.c.bf16 %v169_v20, %v168_v19  ;;  %v1593_v37 = vpack.c.bf16 %v187_v26, %v186_v24 }
  0x26   :  { %482 = vmatmul.mubr.f32.vlgmr.msra.gmra.mrb[0].mxu1 %v17_v49  ;;  %1548 = vmatpush3.bf16.msra.mxu0 %v1547_v50  ;;  %v138_v30 = vld [vmem:[%s2714_s1 + $0x240] sm:$0xff]  ;;  %v139_v34 = vld [vmem:[%s2714_s1 + $0x248] sm:$0xff]  ;;  %v156_v38 = vld [vmem:[%s2714_s1 + $0x2d0] sm:$0xff] }
  0x27   :  { %1580 = vmatpush3.bf16.msra.mxu1 %v1579_v51  ;;  %1550 = vmatprep.subr.bf16.mxu0 %v1549_v52  ;;  %v51_v31 = vld [vmem:[%s2715_s0 + $0x120] sm:$0xff]  ;;  %v171_v36 = vld [vmem:[%s2714_s1 + $0x348] sm:$0xff]  ;;  %v157_v39 = vld [vmem:[%s2714_s1 + $0x2d8] sm:$0xff]  ;;  %v1563_v44 = vpack.c.bf16 %v139_v34, %v138_v30 }
  0x28   :  { %1582 = vmatprep.subr.bf16.mxu1 %v1581_v56  ;;  %406 = vmatprep.mubr.f32.mxu0 %v33_v9  ;;  %v170_v35 = vld [vmem:[%s2714_s1 + $0x340] sm:$0xff]  ;;  %v20_v40 = vld [vmem:[%s2715_s0 + $0x28] sm:$0xff]  ;;  %v188_v41 = vld [vmem:[%s2714_s1 + $0x3d0] sm:$0xff]  ;;  %v1565_v46 = vpack.c.bf16 %v157_v39, %v156_v38 }
  0x29   :  { %486 = vmatprep.mubr.f32.mxu1 %v35_v11  ;;  %407 = vmatmul.mubr.f32.gmra.mrb[2].mxu0 %v32_v12  ;;  %v189_v42 = vld [vmem:[%s2714_s1 + $0x3d8] sm:$0xff]  ;;  %v1595_v45 = vpack.c.bf16 %v171_v36, %v170_v35  ;;  %v140_v47 = vld [vmem:[%s2714_s1 + $0x250] sm:$0xff]  ;;  %v158_v52 = vld [vmem:[%s2714_s1 + $0x2e0] sm:$0xff] }
  0x2a   :  { %1552 = vmatpush3.bf16.msra.mxu0 %v1551_v62  ;;  %487 = vmatmul.mubr.f32.gmra.mrb[2].mxu1 %v34_v16  ;;  %v22_v43 = vld [vmem:[%s2715_s0 + $0x38] sm:$0xff]  ;;  %v172_v49 = vld [vmem:[%s2714_s1 + $0x350] sm:$0xff]  ;;  %v1597_v50 = vpack.c.bf16 %v189_v42, %v188_v41  ;;  %v159_v53 = vld [vmem:[%s2714_s1 + $0x2e8] sm:$0xff] }
  0x2b   :  { %1584 = vmatpush3.bf16.msra.mxu1 %v1583_v1  ;;  %1554 = vmatprep.subr.bf16.mxu0 %v1553_v2  ;;  %v141_v48 = vld [vmem:[%s2714_s1 + $0x258] sm:$0xff]  ;;  %v190_v54 = vld [vmem:[%s2714_s1 + $0x3e0] sm:$0xff]  ;;  %v191_v55 = vld [vmem:[%s2714_s1 + $0x3e8] sm:$0xff]  ;;  %v1569_v58 = vpack.c.bf16 %v159_v53, %v158_v52 }
  0x2c   :  { %1586 = vmatprep.subr.bf16.mxu1 %v1585_v6  ;;  %411 = vmatprep.mubr.f32.mxu0 %v50_v25  ;;  %v173_v51 = vld [vmem:[%s2714_s1 + $0x358] sm:$0xff]  ;;  %v1567_v56 = vpack.c.bf16 %v141_v48, %v140_v47  ;;  %v142_v59 = vld [vmem:[%s2714_s1 + $0x260] sm:$0xff]  ;;  %v143_v60 = vld [vmem:[%s2714_s1 + $0x268] sm:$0xff]  ;;  %v1601_v62 = vpack.c.bf16 %v191_v55, %v190_v54 }
  0x2d   :  { %491 = vmatprep.mubr.f32.mxu1 %v52_v27  ;;  %412 = vmatmul.mubr.f32.gmra.mrb[4].mxu0 %v49_v28  ;;  %v1599_v57 = vpack.c.bf16 %v173_v51, %v172_v49  ;;  %v174_v61 = vld [vmem:[%s2714_s1 + $0x360] sm:$0xff]  ;;  %v175_v63 = vld [vmem:[%s2714_s1 + $0x368] sm:$0xff]  ;;  %v160_v0 = vld [vmem:[%s2714_s1 + $0x2f0] sm:$0xff]  ;;  %v1571_v4 = vpack.c.bf16 %v143_v60, %v142_v59 }
  0x2e   :  { %1556 = vmatpush3.bf16.msra.mxu0 %v1555_v13  ;;  %492 = vmatmul.mubr.f32.gmra.mrb[4].mxu1 %v51_v31  ;;  %v161_v1 = vld [vmem:[%s2714_s1 + $0x2f8] sm:$0xff]  ;;  %v192_v2 = vld [vmem:[%s2714_s1 + $0x3f0] sm:$0xff]  ;;  %v1603_v5 = vpack.c.bf16 %v175_v63, %v174_v61  ;;  %v210_v12 = vld [vmem:[%s2714_s1 + $0x480] sm:$0xff] }
  0x2f   :  { %1588 = vmatpush3.bf16.msra.mxu1 %v1587_v17  ;;  %1558 = vmatprep.subr.bf16.mxu0 %v1557_v18  ;;  %v193_v3 = vld [vmem:[%s2714_s1 + $0x3f8] sm:$0xff]  ;;  %v1573_v6 = vpack.c.bf16 %v161_v1, %v160_v0  ;;  %v144_v7 = vld [vmem:[%s2714_s1 + $0x270] sm:$0xff]  ;;  %v211_v13 = vld [vmem:[%s2714_s1 + $0x488] sm:$0xff] }
  0x30   :  { %1590 = vmatprep.subr.bf16.mxu1 %v1589_v22  ;;  %561 = vmatprep.mubr.f32.mxu0 %v20_v40  ;;  %v145_v8 = vld [vmem:[%s2714_s1 + $0x278] sm:$0xff]  ;;  %v176_v9 = vld [vmem:[%s2714_s1 + $0x370] sm:$0xff]  ;;  %v1605_v10 = vpack.c.bf16 %v193_v3, %v192_v2  ;;  %v242_v14 = vld [vmem:[%s2714_s1 + $0x580] sm:$0xff]  ;;  %v1609_v18 = vpack.c.bf16 %v211_v13, %v210_v12 }
  0x31   :  { %641 = vmatprep.mubr.f32.mxu1 %v22_v43  ;;  %v177_v11 = vld [vmem:[%s2714_s1 + $0x378] sm:$0xff]  ;;  %v243_v15 = vld [vmem:[%s2714_s1 + $0x588] sm:$0xff]  ;;  %v1575_v16 = vpack.c.bf16 %v145_v8, %v144_v7  ;;  %v194_v19 = vld [vmem:[%s2714_s1 + $0x400] sm:$0xff] }
  0x32   :  { %1560 = vmatpush3.bf16.msra.mxu0 %v1559_v29  ;;  %v1607_v17 = vpack.c.bf16 %v177_v11, %v176_v9  ;;  %v195_v20 = vld [vmem:[%s2714_s1 + $0x408] sm:$0xff]  ;;  %v1641_v21 = vpack.c.bf16 %v243_v15, %v242_v14  ;;  %v226_v22 = vld [vmem:[%s2714_s1 + $0x500] sm:$0xff]  ;;  %v212_v24 = vld [vmem:[%s2714_s1 + $0x490] sm:$0xff] }
  0x33   :  { %1592 = vmatpush3.bf16.msra.mxu1 %v1591_v32  ;;  %1562 = vmatprep.subr.bf16.mxu0 %v1561_v33  ;;  %v227_v23 = vld [vmem:[%s2714_s1 + $0x508] sm:$0xff]  ;;  %v213_v25 = vld [vmem:[%s2714_s1 + $0x498] sm:$0xff]  ;;  %v244_v26 = vld [vmem:[%s2714_s1 + $0x590] sm:$0xff]  ;;  %v1611_v30 = vpack.c.bf16 %v195_v20, %v194_v19 }
  0x34   :  { %1594 = vmatprep.subr.bf16.mxu1 %v1593_v37  ;;  %v245_v27 = vld [vmem:[%s2714_s1 + $0x598] sm:$0xff]  ;;  %v19_v28 = vld [vmem:[%s2715_s0 + $0x20] sm:$0xff]  ;;  %v21_v29 = vld [vmem:[%s2715_s0 + $0x30] sm:$0xff]  ;;  %v1643_v31 = vpack.c.bf16 %v227_v23, %v226_v22  ;;  %v1613_v36 = vpack.c.bf16 %v213_v25, %v212_v24 }
  0x35   :  { %v37_v32 = vld [vmem:[%s2715_s0 + $0xb0] sm:$0xff]  ;;  %v197_v34 = vld [vmem:[%s2714_s1 + $0x418] sm:$0xff]  ;;  %v36_v35 = vld [vmem:[%s2715_s0 + $0xa8] sm:$0xff]  ;;  %v1645_v37 = vpack.c.bf16 %v245_v27, %v244_v26 }
  0x36   :  { %1564 = vmatpush3.bf16.msra.mxu0 %v1563_v44  ;;  %v196_v33 = vld [vmem:[%s2714_s1 + $0x410] sm:$0xff]  ;;  %v229_v39 = vld [vmem:[%s2714_s1 + $0x518] sm:$0xff]  ;;  %v214_v40 = vld [vmem:[%s2714_s1 + $0x4a0] sm:$0xff] }
  0x37   :  { %1596 = vmatpush3.bf16.msra.mxu1 %v1595_v45  ;;  %1566 = vmatprep.subr.bf16.mxu0 %v1565_v46  ;;  %v228_v38 = vld [vmem:[%s2714_s1 + $0x510] sm:$0xff]  ;;  %v215_v41 = vld [vmem:[%s2714_s1 + $0x4a8] sm:$0xff]  ;;  %v246_v42 = vld [vmem:[%s2714_s1 + $0x5a0] sm:$0xff]  ;;  %v1615_v45 = vpack.c.bf16 %v197_v34, %v196_v33 }
  0x38   :  { %1598 = vmatprep.subr.bf16.mxu1 %v1597_v50  ;;  %v247_v43 = vld [vmem:[%s2714_s1 + $0x5a8] sm:$0xff]  ;;  %v39_v44 = vld [vmem:[%s2715_s0 + $0xc0] sm:$0xff]  ;;  %v38_v46 = vld [vmem:[%s2715_s0 + $0xb8] sm:$0xff]  ;;  %v1647_v48 = vpack.c.bf16 %v229_v39, %v228_v38  ;;  %v1617_v52 = vpack.c.bf16 %v215_v41, %v214_v40 }
  0x39   :  { %v54_v47 = vld [vmem:[%s2715_s0 + $0x138] sm:$0xff]  ;;  %v198_v49 = vld [vmem:[%s2714_s1 + $0x420] sm:$0xff]  ;;  %v199_v50 = vld [vmem:[%s2714_s1 + $0x428] sm:$0xff]  ;;  %v1649_v53 = vpack.c.bf16 %v247_v43, %v246_v42 }
  0x3a   :  { %1568 = vmatpush3.bf16.msra.mxu0 %v1567_v56  ;;  %v230_v51 = vld [vmem:[%s2714_s1 + $0x520] sm:$0xff]  ;;  %v231_v54 = vld [vmem:[%s2714_s1 + $0x528] sm:$0xff]  ;;  %v216_v55 = vld [vmem:[%s2714_s1 + $0x4b0] sm:$0xff]  ;;  %v1619_v61 = vpack.c.bf16 %v199_v50, %v198_v49 }
  0x3b   :  { %1600 = vmatpush3.bf16.msra.mxu1 %v1599_v57  ;;  %1570 = vmatprep.subr.bf16.mxu0 %v1569_v58  ;;  %v217_v56 = vld [vmem:[%s2714_s1 + $0x4b8] sm:$0xff]  ;;  %v248_v57 = vld [vmem:[%s2714_s1 + $0x5b0] sm:$0xff]  ;;  %v56_v60 = vld [vmem:[%s2715_s0 + $0x148] sm:$0xff]  ;;  %v1651_v63 = vpack.c.bf16 %v231_v54, %v230_v51 }
  0x3c   :  { %1602 = vmatprep.subr.bf16.mxu1 %v1601_v62  ;;  %v249_v58 = vld [vmem:[%s2714_s1 + $0x5b8] sm:$0xff]  ;;  %v53_v59 = vld [vmem:[%s2715_s0 + $0x130] sm:$0xff]  ;;  %v55_v62 = vld [vmem:[%s2715_s0 + $0x140] sm:$0xff]  ;;  %v1621_v0 = vpack.c.bf16 %v217_v56, %v216_v55 }
  0x3d   :  { %v200_v1 = vld [vmem:[%s2714_s1 + $0x430] sm:$0xff]  ;;  %v201_v2 = vld [vmem:[%s2714_s1 + $0x438] sm:$0xff]  ;;  %v219_v7 = vld [vmem:[%s2714_s1 + $0x4c8] sm:$0xff] }
  0x3e   :  { %1572 = vmatpush3.bf16.msra.mxu0 %v1571_v4  ;;  %v232_v3 = vld [vmem:[%s2714_s1 + $0x530] sm:$0xff]  ;;  %v1653_v4 = vpack.c.bf16 %v249_v58, %v248_v57  ;;  %v250_v8 = vld [vmem:[%s2714_s1 + $0x5c0] sm:$0xff]  ;;  %v251_v9 = vld [vmem:[%s2714_s1 + $0x5c8] sm:$0xff]  ;;  %v1623_v11 = vpack.c.bf16 %v201_v2, %v200_v1 }
  0x3f   :  { %1604 = vmatpush3.bf16.msra.mxu1 %v1603_v5  ;;  %1574 = vmatprep.subr.bf16.mxu0 %v1573_v6  ;;  %v233_v5 = vld [vmem:[%s2714_s1 + $0x538] sm:$0xff]  ;;  %v218_v6 = vld [vmem:[%s2714_s1 + $0x4c0] sm:$0xff]  ;;  %v235_v19 = vld [vmem:[%s2714_s1 + $0x548] sm:$0xff] }
  0x40   :  { %1606 = vmatprep.subr.bf16.mxu1 %v1605_v10  ;;  %v24_v10 = vld [vmem:[%s2715_s0 + $0x48] sm:$0xff]  ;;  %v26_v12 = vld [vmem:[%s2715_s0 + $0x58] sm:$0xff]  ;;  %v1655_v13 = vpack.c.bf16 %v233_v5, %v232_v3  ;;  %v1625_v14 = vpack.c.bf16 %v219_v7, %v218_v6  ;;  %v202_v15 = vld [vmem:[%s2714_s1 + $0x440] sm:$0xff] }
  0x41   :  { %v220_v20 = vld [vmem:[%s2714_s1 + $0x4d0] sm:$0xff]  ;;  %v253_v23 = vld [vmem:[%s2714_s1 + $0x5d8] sm:$0xff]  ;;  %v223_v33 = vld [vmem:[%s2714_s1 + $0x4e8] sm:$0xff] }
  0x42   :  { %1576 = vmatpush3.bf16.msra.mxu0 %v1575_v16  ;;  %v203_v16 = vld [vmem:[%s2714_s1 + $0x448] sm:$0xff]  ;;  %v252_v22 = vld [vmem:[%s2714_s1 + $0x5d0] sm:$0xff]  ;;  %v254_v34 = vld [vmem:[%s2714_s1 + $0x5e0] sm:$0xff] }
  0x43   :  { %1608 = vmatpush3.bf16.msra.mxu1 %v1607_v17  ;;  %1610 = vmatprep.subr.bf16.mxu0 %v1609_v18  ;;  %v234_v17 = vld [vmem:[%s2714_s1 + $0x540] sm:$0xff]  ;;  %v1657_v18 = vpack.c.bf16 %v251_v9, %v250_v8  ;;  %v1627_v24 = vpack.c.bf16 %v203_v16, %v202_v15  ;;  %v204_v27 = vld [vmem:[%s2714_s1 + $0x450] sm:$0xff]  ;;  %v207_v40 = vld [vmem:[%s2714_s1 + $0x468] sm:$0xff] }
  0x44   :  { %1642 = vmatprep.subr.bf16.mxu1 %v1641_v21  ;;  %v221_v21 = vld [vmem:[%s2714_s1 + $0x4d8] sm:$0xff]  ;;  %v1659_v25 = vpack.c.bf16 %v235_v19, %v234_v17  ;;  %v206_v39 = vld [vmem:[%s2714_s1 + $0x460] sm:$0xff]  ;;  %v239_v43 = vld [vmem:[%s2714_s1 + $0x568] sm:$0xff] }
  0x45   :  { %562 = vmatmul.mubr.f32.vlgmr.msra.gmra.mrb[6].mxu0 %v19_v28  ;;  %v1629_v26 = vpack.c.bf16 %v221_v21, %v220_v20  ;;  %v205_v28 = vld [vmem:[%s2714_s1 + $0x458] sm:$0xff]  ;;  %v238_v41 = vld [vmem:[%s2714_s1 + $0x560] sm:$0xff]  ;;  %v208_v51 = vld [vmem:[%s2714_s1 + $0x470] sm:$0xff] }
  0x46   :  { %642 = vmatmul.mubr.f32.vlgmr.msra.gmra.mrb[6].mxu1 %v21_v29  ;;  %1612 = vmatpush3.bf16.msra.mxu0 %v1611_v30  ;;  %v236_v29 = vld [vmem:[%s2714_s1 + $0x550] sm:$0xff]  ;;  %v1661_v30 = vpack.c.bf16 %v253_v23, %v252_v22  ;;  %v1667_v49 = vpack.c.bf16 %v239_v43, %v238_v41  ;;  %v241_v55 = vld [vmem:[%s2714_s1 + $0x578] sm:$0xff]  ;;  %v274_v56 = vld [vmem:[%s2714_s1 + $0x680] sm:$0xff] }
  0x47   :  { %1644 = vmatpush3.bf16.msra.mxu1 %v1643_v31  ;;  %566 = vmatprep.mubr.f32.mxu0 %v37_v32  ;;  %v237_v31 = vld [vmem:[%s2714_s1 + $0x558] sm:$0xff]  ;;  %v222_v32 = vld [vmem:[%s2714_s1 + $0x4e0] sm:$0xff]  ;;  %v275_v57 = vld [vmem:[%s2714_s1 + $0x688] sm:$0xff] }
  0x48   :  { %1614 = vmatprep.subr.bf16.mxu0 %v1613_v36  ;;  %1646 = vmatprep.subr.bf16.mxu1 %v1645_v37  ;;  %v1631_v36 = vpack.c.bf16 %v205_v28, %v204_v27  ;;  %v1663_v37 = vpack.c.bf16 %v237_v31, %v236_v29  ;;  %v1633_v38 = vpack.c.bf16 %v223_v33, %v222_v32  ;;  %v306_v58 = vld [vmem:[%s2714_s1 + $0x780] sm:$0xff]  ;;  %v291_v3 = vld [vmem:[%s2714_s1 + $0x708] sm:$0xff]  ;;  %v277_v5 = vld [vmem:[%s2714_s1 + $0x698] sm:$0xff] }
  0x49   :  { %567 = vmatmul.mubr.f32.gmra.mrb[8].mxu0 %v36_v35  ;;  %646 = vmatprep.mubr.f32.mxu1 %v39_v44  ;;  %v255_v35 = vld [vmem:[%s2714_s1 + $0x5e8] sm:$0xff]  ;;  %v224_v44 = vld [vmem:[%s2714_s1 + $0x4f0] sm:$0xff]  ;;  %v290_v2 = vld [vmem:[%s2714_s1 + $0x700] sm:$0xff] }
  0x4a   :  { %1616 = vmatpush3.bf16.msra.mxu0 %v1615_v45  ;;  %647 = vmatmul.mubr.f32.gmra.mrb[8].mxu1 %v38_v46  ;;  %v1665_v42 = vpack.c.bf16 %v255_v35, %v254_v34  ;;  %v225_v45 = vld [vmem:[%s2714_s1 + $0x4f8] sm:$0xff]  ;;  %v256_v46 = vld [vmem:[%s2714_s1 + $0x5f0] sm:$0xff]  ;;  %v23_v8 = vld [vmem:[%s2715_s0 + $0x40] sm:$0xff] }
  0x4b   :  { %1648 = vmatpush3.bf16.msra.mxu1 %v1647_v48  ;;  %571 = vmatprep.mubr.f32.mxu0 %v54_v47  ;;  %v257_v47 = vld [vmem:[%s2714_s1 + $0x5f8] sm:$0xff]  ;;  %v1635_v48 = vpack.c.bf16 %v207_v40, %v206_v39  ;;  %v1637_v50 = vpack.c.bf16 %v225_v45, %v224_v44  ;;  %v308_v6 = vld [vmem:[%s2714_s1 + $0x790] sm:$0xff]  ;;  %v40_v15 = vld [vmem:[%s2715_s0 + $0xc8] sm:$0xff] }
  0x4c   :  { %1618 = vmatprep.subr.bf16.mxu0 %v1617_v52  ;;  %1650 = vmatprep.subr.bf16.mxu1 %v1649_v53  ;;  %v209_v52 = vld [vmem:[%s2714_s1 + $0x478] sm:$0xff]  ;;  %v240_v53 = vld [vmem:[%s2714_s1 + $0x570] sm:$0xff]  ;;  %v1669_v54 = vpack.c.bf16 %v257_v47, %v256_v46  ;;  %v278_v20 = vld [vmem:[%s2714_s1 + $0x6a0] sm:$0xff] }
  0x4d   :  { %572 = vmatmul.mubr.f32.gmra.mrb[10].mxu0 %v53_v59  ;;  %651 = vmatprep.mubr.f32.mxu1 %v56_v60  ;;  %v307_v59 = vld [vmem:[%s2714_s1 + $0x788] sm:$0xff]  ;;  %v1639_v60 = vpack.c.bf16 %v209_v52, %v208_v51  ;;  %v309_v7 = vld [vmem:[%s2714_s1 + $0x798] sm:$0xff]  ;;  %v25_v9 = vld [vmem:[%s2715_s0 + $0x50] sm:$0xff] }
  0x4e   :  { %1620 = vmatpush3.bf16.msra.mxu0 %v1619_v61  ;;  %652 = vmatmul.mubr.f32.gmra.mrb[10].mxu1 %v55_v62  ;;  %v1671_v61 = vpack.c.bf16 %v241_v55, %v240_v53  ;;  %v1673_v62 = vpack.c.bf16 %v275_v57, %v274_v56  ;;  %v1705_v1 = vpack.c.bf16 %v307_v59, %v306_v58  ;;  %v293_v19 = vld [vmem:[%s2714_s1 + $0x718] sm:$0xff]  ;;  %v279_v21 = vld [vmem:[%s2714_s1 + $0x6a8] sm:$0xff]  ;;  %v310_v22 = vld [vmem:[%s2714_s1 + $0x7a0] sm:$0xff] }
  0x4f   :  { %1652 = vmatpush3.bf16.msra.mxu1 %v1651_v63  ;;  %1622 = vmatprep.subr.bf16.mxu0 %v1621_v0  ;;  %v258_v63 = vld [vmem:[%s2714_s1 + $0x600] sm:$0xff]  ;;  %v259_v0 = vld [vmem:[%s2714_s1 + $0x608] sm:$0xff]  ;;  %v1709_v17 = vpack.c.bf16 %v309_v7, %v308_v6  ;;  %v58_v27 = vld [vmem:[%s2715_s0 + $0x158] sm:$0xff]  ;;  %v1681_v32 = vpack.c.bf16 %v279_v21, %v278_v20 }
  0x50   :  { %1654 = vmatprep.subr.bf16.mxu1 %v1653_v4  ;;  %721 = vmatprep.mubr.f32.mxu0 %v24_v10  ;;  %v276_v4 = vld [vmem:[%s2714_s1 + $0x690] sm:$0xff]  ;;  %v1675_v10 = vpack.c.bf16 %v259_v0, %v258_v63  ;;  %v311_v23 = vld [vmem:[%s2714_s1 + $0x7a8] sm:$0xff]  ;;  %v262_v29 = vld [vmem:[%s2714_s1 + $0x620] sm:$0xff] }
  0x51   :  { %801 = vmatprep.mubr.f32.mxu1 %v26_v12  ;;  %v41_v12 = vld [vmem:[%s2715_s0 + $0xd0] sm:$0xff]  ;;  %v1677_v16 = vpack.c.bf16 %v277_v5, %v276_v4  ;;  %v294_v31 = vld [vmem:[%s2714_s1 + $0x720] sm:$0xff]  ;;  %v1713_v33 = vpack.c.bf16 %v311_v23, %v310_v22  ;;  %v295_v34 = vld [vmem:[%s2714_s1 + $0x728] sm:$0xff] }
  0x52   :  { %1624 = vmatpush3.bf16.msra.mxu0 %v1623_v11  ;;  %v1707_v11 = vpack.c.bf16 %v291_v3, %v290_v2  ;;  %v280_v35 = vld [vmem:[%s2714_s1 + $0x6b0] sm:$0xff]  ;;  %v60_v40 = vld [vmem:[%s2715_s0 + $0x168] sm:$0xff]  ;;  %v1715_v43 = vpack.c.bf16 %v295_v34, %v294_v31  ;;  %v265_v46 = vld [vmem:[%s2714_s1 + $0x638] sm:$0xff] }
  0x53   :  { %1656 = vmatpush3.bf16.msra.mxu1 %v1655_v13  ;;  %1626 = vmatprep.subr.bf16.mxu0 %v1625_v14  ;;  %v260_v13 = vld [vmem:[%s2714_s1 + $0x610] sm:$0xff]  ;;  %v261_v14 = vld [vmem:[%s2714_s1 + $0x618] sm:$0xff]  ;;  %v283_v51 = vld [vmem:[%s2714_s1 + $0x6c8] sm:$0xff] }
  0x54   :  { %1658 = vmatprep.subr.bf16.mxu1 %v1657_v18  ;;  %v292_v18 = vld [vmem:[%s2714_s1 + $0x710] sm:$0xff]  ;;  %v314_v52 = vld [vmem:[%s2714_s1 + $0x7c0] sm:$0xff]  ;;  %v315_v53 = vld [vmem:[%s2714_s1 + $0x7c8] sm:$0xff] }
  0x55   :  { %v1711_v28 = vpack.c.bf16 %v293_v19, %v292_v18  ;;  %v57_v39 = vld [vmem:[%s2715_s0 + $0x150] sm:$0xff]  ;;  %v30_v56 = vld [vmem:[%s2715_s0 + $0x78] sm:$0xff]  ;;  %v266_v59 = vld [vmem:[%s2714_s1 + $0x640] sm:$0xff] }
  0x56   :  { %1628 = vmatpush3.bf16.msra.mxu0 %v1627_v24  ;;  %v43_v24 = vld [vmem:[%s2715_s0 + $0xe0] sm:$0xff]  ;;  %v264_v45 = vld [vmem:[%s2714_s1 + $0x630] sm:$0xff]  ;;  %v299_v63 = vld [vmem:[%s2714_s1 + $0x748] sm:$0xff] }
  0x57   :  { %1660 = vmatpush3.bf16.msra.mxu1 %v1659_v25  ;;  %1630 = vmatprep.subr.bf16.mxu0 %v1629_v26  ;;  %v1679_v25 = vpack.c.bf16 %v261_v14, %v260_v13  ;;  %v42_v26 = vld [vmem:[%s2715_s0 + $0xd8] sm:$0xff]  ;;  %v296_v47 = vld [vmem:[%s2714_s1 + $0x730] sm:$0xff]  ;;  %v1687_v55 = vpack.c.bf16 %v265_v46, %v264_v45  ;;  %v287_v13 = vld [vmem:[%s2714_s1 + $0x6e8] sm:$0xff] }
  0x58   :  { %1662 = vmatprep.subr.bf16.mxu1 %v1661_v30  ;;  %v263_v30 = vld [vmem:[%s2714_s1 + $0x628] sm:$0xff]  ;;  %v284_v0 = vld [vmem:[%s2714_s1 + $0x6d0] sm:$0xff]  ;;  %v317_v3 = vld [vmem:[%s2714_s1 + $0x7d8] sm:$0xff] }
  0x59   :  { %v1683_v41 = vpack.c.bf16 %v263_v30, %v262_v29  ;;  %v316_v2 = vld [vmem:[%s2714_s1 + $0x7d0] sm:$0xff]  ;;  %v318_v14 = vld [vmem:[%s2714_s1 + $0x7e0] sm:$0xff]  ;;  %v271_v20 = vld [vmem:[%s2714_s1 + $0x668] sm:$0xff] }
  0x5a   :  { %1632 = vmatpush3.bf16.msra.mxu0 %v1631_v36  ;;  %v281_v36 = vld [vmem:[%s2714_s1 + $0x6b8] sm:$0xff]  ;;  %v268_v7 = vld [vmem:[%s2714_s1 + $0x650] sm:$0xff]  ;;  %v270_v19 = vld [vmem:[%s2714_s1 + $0x660] sm:$0xff] }
  0x5b   :  { %1664 = vmatpush3.bf16.msra.mxu1 %v1663_v37  ;;  %1634 = vmatprep.subr.bf16.mxu0 %v1633_v38  ;;  %v312_v37 = vld [vmem:[%s2714_s1 + $0x7b0] sm:$0xff]  ;;  %v313_v38 = vld [vmem:[%s2714_s1 + $0x7b8] sm:$0xff]  ;;  %v1685_v44 = vpack.c.bf16 %v281_v36, %v280_v35  ;;  %v302_v21 = vld [vmem:[%s2714_s1 + $0x760] sm:$0xff] }
  0x5c   :  { %1666 = vmatprep.subr.bf16.mxu1 %v1665_v42  ;;  %v59_v42 = vld [vmem:[%s2715_s0 + $0x160] sm:$0xff]  ;;  %v303_v23 = vld [vmem:[%s2714_s1 + $0x768] sm:$0xff]  ;;  %v272_v31 = vld [vmem:[%s2714_s1 + $0x670] sm:$0xff] }
  0x5d   :  { %v1731_v29 = vpack.c.bf16 %v303_v23, %v302_v21  ;;  %v304_v34 = vld [vmem:[%s2714_s1 + $0x770] sm:$0xff]  ;;  %v305_v35 = vld [vmem:[%s2714_s1 + $0x778] sm:$0xff] }
  0x5e   :  { %1636 = vmatpush3.bf16.msra.mxu0 %v1635_v48  ;;  %v1717_v48 = vpack.c.bf16 %v313_v38, %v312_v37  ;;  %v1735_v37 = vpack.c.bf16 %v305_v35, %v304_v34  ;;  %v27_v38 = vld [vmem:[%s2715_s0 + $0x60] sm:$0xff]  ;;  %v46_v45 = vld [vmem:[%s2715_s0 + $0xf8] sm:$0xff] }
  0x5f   :  { %1668 = vmatpush3.bf16.msra.mxu1 %v1667_v49  ;;  %1638 = vmatprep.subr.bf16.mxu0 %v1637_v50  ;;  %v297_v49 = vld [vmem:[%s2714_s1 + $0x738] sm:$0xff]  ;;  %v282_v50 = vld [vmem:[%s2714_s1 + $0x6c0] sm:$0xff] }
  0x60   :  { %1670 = vmatprep.subr.bf16.mxu1 %v1669_v54  ;;  %v28_v54 = vld [vmem:[%s2715_s0 + $0x68] sm:$0xff]  ;;  %v1719_v57 = vpack.c.bf16 %v297_v49, %v296_v47  ;;  %v1689_v58 = vpack.c.bf16 %v283_v51, %v282_v50  ;;  %v62_v46 = vld [vmem:[%s2715_s0 + $0x178] sm:$0xff]  ;;  %v63_v49 = vld [vmem:[%s2715_s0 + $0x180] sm:$0xff] }
  0x61   :  { %v64_v47 = vld [vmem:[%s2715_s0 + $0x188] sm:$0xff]  ;;  %v31_v50 = vld [vmem:[%s2715_s0 + $0x80] sm:$0xff] }
  0x62   :  { %1640 = vmatpush3.bf16.msra.mxu0 %v1639_v60  ;;  %v267_v60 = vld [vmem:[%s2714_s1 + $0x648] sm:$0xff] }
  0x63   :  { %1672 = vmatpush3.bf16.msra.mxu1 %v1671_v61  ;;  %1674 = vmatprep.subr.bf16.mxu0 %v1673_v62  ;;  %v298_v61 = vld [vmem:[%s2714_s1 + $0x740] sm:$0xff]  ;;  %v1721_v62 = vpack.c.bf16 %v315_v53, %v314_v52  ;;  %v1691_v4 = vpack.c.bf16 %v267_v60, %v266_v59  ;;  %v48_v51 = vld [vmem:[%s2715_s0 + $0x108] sm:$0xff]  ;;  %v65_v52 = vld [vmem:[%s2715_s0 + $0x190] sm:$0xff] }
  0x64   :  { %1706 = vmatprep.subr.bf16.mxu1 %v1705_v1  ;;  %v285_v1 = vld [vmem:[%s2714_s1 + $0x6d8] sm:$0xff]  ;;  %v1723_v5 = vpack.c.bf16 %v299_v63, %v298_v61 }
  0x65   :  { %722 = vmatmul.mubr.f32.vlgmr.msra.gmra.mrb[12].mxu0 %v23_v8  ;;  %v1693_v6 = vpack.c.bf16 %v285_v1, %v284_v0  ;;  %v269_v8 = vld [vmem:[%s2714_s1 + $0x658] sm:$0xff] }
  0x66   :  { %802 = vmatmul.mubr.f32.vlgmr.msra.gmra.mrb[12].mxu1 %v25_v9  ;;  %1676 = vmatpush3.bf16.msra.mxu0 %v1675_v10  ;;  %v300_v9 = vld [vmem:[%s2714_s1 + $0x750] sm:$0xff]  ;;  %v1725_v10 = vpack.c.bf16 %v317_v3, %v316_v2 }
  0x67   :  { %1708 = vmatpush3.bf16.msra.mxu1 %v1707_v11  ;;  %726 = vmatprep.mubr.f32.mxu0 %v41_v12  ;;  %v301_v11 = vld [vmem:[%s2714_s1 + $0x758] sm:$0xff]  ;;  %v286_v12 = vld [vmem:[%s2714_s1 + $0x6e0] sm:$0xff] }
  0x68   :  { %1678 = vmatprep.subr.bf16.mxu0 %v1677_v16  ;;  %1710 = vmatprep.subr.bf16.mxu1 %v1709_v17  ;;  %v1695_v16 = vpack.c.bf16 %v269_v8, %v268_v7  ;;  %v1727_v17 = vpack.c.bf16 %v301_v11, %v300_v9  ;;  %v1697_v18 = vpack.c.bf16 %v287_v13, %v286_v12 }
  0x69   :  { %727 = vmatmul.mubr.f32.gmra.mrb[14].mxu0 %v40_v15  ;;  %806 = vmatprep.mubr.f32.mxu1 %v43_v24  ;;  %v319_v15 = vld [vmem:[%s2714_s1 + $0x7e8] sm:$0xff]  ;;  %v288_v24 = vld [vmem:[%s2714_s1 + $0x6f0] sm:$0xff] }
  0x6a   :  { %1680 = vmatpush3.bf16.msra.mxu0 %v1679_v25  ;;  %807 = vmatmul.mubr.f32.gmra.mrb[14].mxu1 %v42_v26  ;;  %v1729_v22 = vpack.c.bf16 %v319_v15, %v318_v14  ;;  %v289_v25 = vld [vmem:[%s2714_s1 + $0x6f8] sm:$0xff]  ;;  %v320_v26 = vld [vmem:[%s2714_s1 + $0x7f0] sm:$0xff] }
  0x6b   :  { %1712 = vmatpush3.bf16.msra.mxu1 %v1711_v28  ;;  %731 = vmatprep.mubr.f32.mxu0 %v58_v27  ;;  %v321_v27 = vld [vmem:[%s2714_s1 + $0x7f8] sm:$0xff]  ;;  %v1699_v28 = vpack.c.bf16 %v271_v20, %v270_v19  ;;  %v1701_v30 = vpack.c.bf16 %v289_v25, %v288_v24 }
  0x6c   :  { %1682 = vmatprep.subr.bf16.mxu0 %v1681_v32  ;;  %1714 = vmatprep.subr.bf16.mxu1 %v1713_v33  ;;  %v273_v32 = vld [vmem:[%s2714_s1 + $0x678] sm:$0xff]  ;;  %v1733_v33 = vpack.c.bf16 %v321_v27, %v320_v26 }
  0x6d   :  { %732 = vmatmul.mubr.f32.gmra.mrb[16].mxu0 %v57_v39  ;;  %811 = vmatprep.mubr.f32.mxu1 %v60_v40  ;;  %v1703_v36 = vpack.c.bf16 %v273_v32, %v272_v31  ;;  %v29_v39 = vld [vmem:[%s2715_s0 + $0x70] sm:$0xff]  ;;  %v1753_v40 = vmov 0.0  }
  0x6e   :  { %1684 = vmatpush3.bf16.msra.mxu0 %v1683_v41  ;;  %812 = vmatmul.mubr.f32.gmra.mrb[16].mxu1 %v59_v42  ;;  %v322_v41 = vld [vmem:[%s2714_s1 + $0x800] sm:$0xf]  ;;  %v45_v42 = vld [vmem:[%s2715_s0 + $0xf0] sm:$0xff] }
  0x6f   :  { %1716 = vmatpush3.bf16.msra.mxu1 %v1715_v43  ;;  %1686 = vmatprep.subr.bf16.mxu0 %v1685_v44  ;;  %v47_v43 = vld [vmem:[%s2715_s0 + $0x100] sm:$0xff]  ;;  %v44_v44 = vld [vmem:[%s2715_s0 + $0xe8] sm:$0xff] }
  0x70   :  { %1718 = vmatprep.subr.bf16.mxu1 %v1717_v48  ;;  %881 = vmatprep.mubr.f32.mxu0 %v28_v54  ;;  %v61_v48 = vld [vmem:[%s2715_s0 + $0x170] sm:$0xff] }
  0x71   :  { %961 = vmatprep.mubr.f32.mxu1 %v30_v56 }
  0x72   :  { %1688 = vmatpush3.bf16.msra.mxu0 %v1687_v55 }
  0x73   :  { %1720 = vmatpush3.bf16.msra.mxu1 %v1719_v57  ;;  %1690 = vmatprep.subr.bf16.mxu0 %v1689_v58 }
  0x74   :  { %1722 = vmatprep.subr.bf16.mxu1 %v1721_v62 }
  0x76   :  { %1692 = vmatpush3.bf16.msra.mxu0 %v1691_v4 }
  0x77   :  { %1724 = vmatpush3.bf16.msra.mxu1 %v1723_v5  ;;  %1694 = vmatprep.subr.bf16.mxu0 %v1693_v6 }
  0x78   :  { %1726 = vmatprep.subr.bf16.mxu1 %v1725_v10 }
  0x7a   :  { %1696 = vmatpush3.bf16.msra.mxu0 %v1695_v16 }
  0x7b   :  { %1728 = vmatpush3.bf16.msra.mxu1 %v1727_v17  ;;  %1698 = vmatprep.subr.bf16.mxu0 %v1697_v18 }
  0x7c   :  { %1730 = vmatprep.subr.bf16.mxu1 %v1729_v22 }
  0x7e   :  { %1700 = vmatpush3.bf16.msra.mxu0 %v1699_v28 }
  0x7f   :  { %1732 = vmatpush3.bf16.msra.mxu1 %v1731_v29  ;;  %1702 = vmatprep.subr.bf16.mxu0 %v1701_v30 }
  0x80   :  { %1734 = vmatprep.subr.bf16.mxu1 %v1733_v33 }
  0x82   :  { %1704 = vmatpush3.bf16.msra.mxu0 %v1703_v36 }
  0x83   :  { %1736 = vmatpush3.bf16.msra.mxu1 %v1735_v37  ;;  %1470 = vmatprep.subr.mxu0 %v1753_v40 }
  0x84   :  { %1737 = vmatprep.subr.mxu1 %v1753_v40 }
  0x85   :  { %882 = vmatmul.mubr.f32.vlgmr.msra.gmra.mrb[18].mxu0 %v27_v38 }
  0x86   :  { %962 = vmatmul.mubr.f32.vlgmr.msra.gmra.mrb[18].mxu1 %v29_v39  ;;  %1471 = vmatpush3.msk.msra.mxu0 %vm333_vm0, %v322_v41 }
  0x87   :  { %1738 = vmatpush3.msk.msra.mxu1 %vm333_vm0, %v322_v41  ;;  %886 = vmatprep.mubr.f32.mxu0 %v45_v42 }
  0x88   :  { %966 = vmatprep.mubr.f32.mxu1 %v47_v43 }
  0x89   :  { %887 = vmatmul.mubr.f32.gmra.mrb[20].mxu0 %v44_v44 }
  0x8a   :  { %967 = vmatmul.mubr.f32.gmra.mrb[20].mxu1 %v46_v45  ;;  %891 = vmatprep.mubr.f32.mxu0 %v62_v46 }
  0x8b   :  { %971 = vmatprep.mubr.f32.mxu1 %v64_v47 }
  0x8d   :  { %892 = vmatmul.mubr.f32.gmra.mrb[22].mxu0 %v61_v48 }
  0x8e   :  { %972 = vmatmul.mubr.f32.gmra.mrb[22].mxu1 %v63_v49  ;;  %1472 = vmatprep.mubr.msk.f32.mxu0 %vm1754_vm1, %v1753_v40 }
  0x8f   :  { %1475 = vmatprep.mubr.msk.f32.mxu1 %vm1754_vm1, %v1753_v40 }
  0x91   :  { %1473 = vmatmul.mubr.msk.f32.vlgmr.msra.gmra.mrb[24].mxu0 %vm323_vm2, %v31_v50 }
  0x92   :  { %1476 = vmatmul.mubr.msk.f32.vlgmr.msra.gmra.mrb[24].mxu1 %vm323_vm2, %v48_v51 }
  0x93   :  { %1478 = vmatprep.mubr.msk.f32.mxu1 %vm1754_vm1, %v1753_v40 }
  0x96   :  { %1479 = vmatmul.mubr.msk.f32.gmra.mrb[26].mxu1 %vm323_vm2, %v65_v52 }
  0xf8   :  { %v1170_v53 = vpop.f32.mrb[0].mxu0 }
  0xf9   :  { %v1211_v54 = vpop.f32.mrb[0].mxu1  ;;  %v1171_v55 = vpop.f32.mrb[1].mxu0 }
  0xfa   :  { %v1172_v56 = vadd.f32 %v1171_v55, %v1170_v53  ;;  %v1212_v57 = vpop.f32.mrb[1].mxu1 }
  0xfb   :  { %v1213_v58 = vadd.f32 %v1212_v57, %v1211_v54 }
  0xfc   :  { %v1173_v60 = vpop.f32.mrb[2].mxu0 }
  0xfd   :  { %v484_v59 = vadd.f32 %v1213_v58, %v1172_v56  ;;  %v1214_v61 = vpop.f32.mrb[2].mxu1  ;;  %v1174_v62 = vpop.f32.mrb[3].mxu0 }
  0xfe   :  { %v1175_v63 = vadd.f32 %v1174_v62, %v1173_v60  ;;  %v1215_v0 = vpop.f32.mrb[3].mxu1 }
  0xff   :  { %v1216_v1 = vadd.f32 %v1215_v0, %v1214_v61 }
 0x100   :  { %v1176_v2 = vpop.f32.mrb[4].mxu0 }
 0x101   :  { %v489_v3 = vadd.f32 %v1216_v1, %v1175_v63  ;;  %v1217_v4 = vpop.f32.mrb[4].mxu1  ;;  %v1177_v5 = vpop.f32.mrb[5].mxu0 }
 0x102   :  { %v1178_v6 = vadd.f32 %v1177_v5, %v1176_v2  ;;  %v1218_v7 = vpop.f32.mrb[5].mxu1 }
 0x103   :  { %v1219_v8 = vadd.f32 %v1218_v7, %v1217_v4 }
 0x105   :  { %v494_v9 = vadd.f32 %v1219_v8, %v1178_v6 }
 0x118   :  { %v1252_v10 = vpop.f32.mrb[6].mxu0 }
 0x119   :  { %v1293_v11 = vpop.f32.mrb[6].mxu1  ;;  %v1253_v12 = vpop.f32.mrb[7].mxu0 }
 0x11a   :  { %v1254_v13 = vadd.f32 %v1253_v12, %v1252_v10  ;;  %v1294_v14 = vpop.f32.mrb[7].mxu1 }
 0x11b   :  { %v1295_v15 = vadd.f32 %v1294_v14, %v1293_v11 }
 0x11c   :  { %v564_v16 = vadd.f32 %v1254_v13, %v484_v59  ;;  %v1255_v17 = vpop.f32.mrb[8].mxu0 }
 0x11d   :  { %v1256_v18 = vpop.f32.mrb[9].mxu0  ;;  %v1296_v19 = vpop.f32.mrb[8].mxu1 }
 0x11e   :  { %v644_v20 = vadd.f32 %v1295_v15, %v564_v16  ;;  %v1257_v21 = vadd.f32 %v1256_v18, %v1255_v17  ;;  %v1297_v22 = vpop.f32.mrb[9].mxu1  ;;  %v1137_v17 = vld [vmem:[%s2716_s2] ss:$0 sm:$0xff] }
 0x11f   :  { %v1298_v23 = vadd.f32 %v1297_v22, %v1296_v19 }
 0x120   :  { %v569_v24 = vadd.f32 %v1257_v21, %v489_v3  ;;  %v1258_v25 = vpop.f32.mrb[10].mxu0 }
 0x121   :  { %v1259_v26 = vpop.f32.mrb[11].mxu0  ;;  %v1299_v27 = vpop.f32.mrb[10].mxu1 }
 0x122   :  { %v649_v28 = vadd.f32 %v1298_v23, %v569_v24  ;;  %v1260_v29 = vadd.f32 %v1259_v26, %v1258_v25  ;;  %v1300_v30 = vpop.f32.mrb[11].mxu1 }
 0x123   :  { %v1301_v31 = vadd.f32 %v1300_v30, %v1299_v27 }
 0x124   :  { %v574_v32 = vadd.f32 %v1260_v29, %v494_v9 }
 0x126   :  { %v654_v33 = vadd.f32 %v1301_v31, %v574_v32 }
 0x138   :  { %v1334_v34 = vpop.f32.mrb[12].mxu0 }
 0x139   :  { %v1375_v35 = vpop.f32.mrb[12].mxu1  ;;  %v1335_v36 = vpop.f32.mrb[13].mxu0 }
 0x13a   :  { %v1336_v37 = vadd.f32 %v1335_v36, %v1334_v34  ;;  %v1376_v38 = vpop.f32.mrb[13].mxu1 }
 0x13b   :  { %v1377_v39 = vadd.f32 %v1376_v38, %v1375_v35 }
 0x13c   :  { %v724_v40 = vadd.f32 %v1336_v37, %v644_v20  ;;  %v1337_v41 = vpop.f32.mrb[14].mxu0 }
 0x13d   :  { %v1338_v42 = vpop.f32.mrb[15].mxu0  ;;  %v1378_v43 = vpop.f32.mrb[14].mxu1 }
 0x13e   :  { %v804_v44 = vadd.f32 %v1377_v39, %v724_v40  ;;  %v1339_v45 = vadd.f32 %v1338_v42, %v1337_v41  ;;  %v1379_v46 = vpop.f32.mrb[15].mxu1 }
 0x13f   :  { %v1380_v47 = vadd.f32 %v1379_v46, %v1378_v43 }
 0x140   :  { %v729_v48 = vadd.f32 %v1339_v45, %v649_v28  ;;  %v1340_v49 = vpop.f32.mrb[16].mxu0 }
 0x141   :  { %v1341_v50 = vpop.f32.mrb[17].mxu0  ;;  %v1381_v51 = vpop.f32.mrb[16].mxu1 }
 0x142   :  { %v809_v52 = vadd.f32 %v1380_v47, %v729_v48  ;;  %v1342_v53 = vadd.f32 %v1341_v50, %v1340_v49  ;;  %v1382_v54 = vpop.f32.mrb[17].mxu1 }
 0x143   :  { %v1383_v55 = vadd.f32 %v1382_v54, %v1381_v51 }
 0x144   :  { %v734_v56 = vadd.f32 %v1342_v53, %v654_v33 }
 0x146   :  { %v814_v57 = vadd.f32 %v1383_v55, %v734_v56 }
 0x158   :  { %v1416_v58 = vpop.f32.mrb[18].mxu0 }
 0x159   :  { %v1457_v59 = vpop.f32.mrb[18].mxu1  ;;  %v1417_v60 = vpop.f32.mrb[19].mxu0 }
 0x15a   :  { %v1418_v61 = vadd.f32 %v1417_v60, %v1416_v58  ;;  %v1458_v62 = vpop.f32.mrb[19].mxu1 }
 0x15b   :  { %v1459_v63 = vadd.f32 %v1458_v62, %v1457_v59 }
 0x15c   :  { %v884_v0 = vadd.f32 %v1418_v61, %v804_v44  ;;  %v1419_v1 = vpop.f32.mrb[20].mxu0 }
 0x15d   :  { %v1460_v2 = vpop.f32.mrb[20].mxu1  ;;  %v1420_v3 = vpop.f32.mrb[21].mxu0 }
 0x15e   :  { %v1421_v4 = vadd.f32 %v1420_v3, %v1419_v1  ;;  %v1461_v5 = vpop.f32.mrb[21].mxu1  ;;  %v964_v6 = vadd.f32 %v1459_v63, %v884_v0 }
 0x15f   :  { %v1462_v7 = vadd.f32 %v1461_v5, %v1460_v2 }
 0x160   :  { %v889_v8 = vadd.f32 %v1421_v4, %v809_v52  ;;  %v1422_v9 = vpop.f32.mrb[22].mxu0 }
 0x161   :  { %v1463_v10 = vpop.f32.mrb[22].mxu1  ;;  %v1423_v11 = vpop.f32.mrb[23].mxu0 }
 0x162   :  { %v1424_v12 = vadd.f32 %v1423_v11, %v1422_v9  ;;  %v1464_v13 = vpop.f32.mrb[23].mxu1  ;;  %v969_v14 = vadd.f32 %v1462_v7, %v889_v8 }
 0x163   :  { %v1465_v15 = vadd.f32 %v1464_v13, %v1463_v10 }
 0x164   :  { %v894_v16 = vadd.f32 %v1424_v12, %v814_v57  ;;  %v1043_v18 = vpop.f32.mrb[24].mxu0 }
 0x165   :  { %v1044_v19 = vadd.f32 %v1043_v18, %v964_v6  ;;  %v1048_v20 = vpop.f32.mrb[24].mxu1  ;;  %v1474_v21 = vpop.f32.mrb[25].mxu0 }
 0x166   :  { %v1049_v22 = vadd.f32 %v1048_v20, %v969_v14  ;;  %v1477_v23 = vpop.f32.mrb[25].mxu1  ;;  %v974_v24 = vadd.f32 %v1465_v15, %v894_v16 }
 0x167   :  { %v1063_v25 = vsub.f32 %v1137_v17, %v1044_v19 }
 0x168   :  { %v1064_v26 = vsub.f32 %v1137_v17, %v1049_v22 }
 0x169   :  { %v1069_v27 = vand.u32 2147483647, %v1063_v25  ;;  %v1053_v28 = vpop.f32.mrb[26].mxu1  ;;  %v1066_v55 = vmin.f32 %v1063_v25, 0.0 }
 0x16a   :  { %v1070_v29 = vand.u32 2147483647, %v1064_v26  ;;  %v1054_v30 = vadd.f32 %v1053_v28, %v974_v24  ;;  %v1480_v31 = vpop.f32.mrb[27].mxu1  ;;  %v1067_v0 = vmin.f32 %v1064_v26, 0.0 }
 0x16b   :  { %v1072_v32 = vsub.f32 0.0, %v1069_v27 }
 0x16c   :  { %v1073_v33 = vsub.f32 0.0, %v1070_v29  ;;  %v1065_v34 = vsub.f32 %v1137_v17, %v1054_v30 }
 0x16d   :  { %v1075_v35 = vmul.f32 1.442695, %v1072_v32 }
 0x16e   :  { %v1077_v36 = vmul.f32 1.442695, %v1073_v33  ;;  %v1071_v37 = vand.u32 2147483647, %v1065_v34  ;;  %v1068_v7 = vmin.f32 %v1065_v34, 0.0 }
 0x16f   :  { %1741 = vpow2.f32 %v1075_v35 }
 0x170   :  { %1743 = vpow2.f32 %v1077_v36  ;;  %v1074_v38 = vsub.f32 0.0, %v1071_v37 }
 0x172   :  { %v1079_v39 = vmul.f32 1.442695, %v1074_v38 }
 0x174   :  { %1745 = vpow2.f32 %v1079_v39 }
 0x179   :  { %v1742_v40 = vpop.eup %1741 }
 0x17a   :  { %v1744_v41 = vpop.eup %1743  ;;  %v1081_v42 = vadd.f32 1.0, %v1742_v40  ;;  %v1084_v45 = vmul.f32 -0.5, %v1742_v40  ;;  %v1087_v49 = vand.u32 2147483647, %v1742_v40 }
 0x17b   :  { %v1090_v43 = vadd.f32 1.0, %v1744_v41  ;;  %v1093_v47 = vmul.f32 -0.5, %v1744_v41  ;;  %v1096_v52 = vand.u32 2147483647, %v1744_v41 }
 0x17c   :  { %1747 = vlog2.f32 %v1081_v42  ;;  %v1085_v48 = vadd.f32 1.0, %v1084_v45  ;;  %vm1088_vm3 = vcmp.lt.f32.partialorder %v1087_v49, 0.0004427343 }
 0x17d   :  { %1749 = vlog2.f32 %v1090_v43  ;;  %v1094_v51 = vadd.f32 1.0, %v1093_v47  ;;  %vm1097_vm5 = vcmp.lt.f32.partialorder %v1096_v52, 0.0004427343 }
 0x17e   :  { %v1746_v44 = vpop.eup %1745  ;;  %v1086_v57 = vmul.f32 %v1742_v40, %v1085_v48 }
 0x17f   :  { %v1099_v46 = vadd.f32 1.0, %v1746_v44  ;;  %v1102_v50 = vmul.f32 -0.5, %v1746_v44  ;;  %v1095_v60 = vmul.f32 %v1744_v41, %v1094_v51  ;;  %v1105_v62 = vand.u32 2147483647, %v1746_v44 }
 0x181   :  { %1751 = vlog2.f32 %v1099_v46  ;;  %v1103_v58 = vadd.f32 1.0, %v1102_v50  ;;  %vm1106_vm6 = vcmp.lt.f32.partialorder %v1105_v62, 0.0004427343 }
 0x183   :  { %v1104_v5 = vmul.f32 %v1746_v44, %v1103_v58 }
 0x186   :  { %v1748_v53 = vpop.eup %1747 }
 0x187   :  { %v1750_v54 = vpop.eup %1749  ;;  %v1083_v56 = vmul.f32 0.6931472, %v1748_v53 }
 0x188   :  { %v1092_v59 = vmul.f32 0.6931472, %v1750_v54 }
 0x189   :  { %v1089_v61 = vsel %vm1088_vm3, %v1086_v57, %v1083_v56 }
 0x18a   :  { %v1108_v63 = vsub.f32 %v1066_v55, %v1089_v61  ;;  %v1098_v1 = vsel %vm1097_vm5, %v1095_v60, %v1092_v59 }
 0x18b   :  { %v1752_v2 = vpop.eup %1751  ;;  %v1109_v6 = vsub.f32 %v1067_v0, %v1098_v1 }
 0x18c   :  { %v1112_v3 = vsel %vm1111_vm4, %v1108_v63, 0.0  ;;  %v1101_v4 = vmul.f32 0.6931472, %v1752_v2 }
 0x18d   :  { %1113 = vadd.xlane.f32.xlu0 %v1112_v3  ;;  %v1115_v10 = vsel %vm1111_vm4, %v1109_v6, 0.0 }
 0x18e   :  { %v1107_v8 = vsel %vm1106_vm6, %v1104_v5, %v1101_v4 }
 0x18f   :  { %v1110_v9 = vsub.f32 %v1068_v7, %v1107_v8 }
 0x191   :  { %v1118_v11 = vsel %vm1111_vm4, %v1110_v9, 0.0  ;;  %1116 = vadd.xlane.f32.xlu0 %v1115_v10 }
 0x192   :  { %1119 = vadd.xlane.f32.xlu1 %v1118_v11 }
 0x21a   :  { %v1114_v12 = vpop.xlane.xlu0 %1113 }
 0x21b   :  { %v1122_v13 = vmul.f32 0.033333335, %v1114_v12 }
 0x21d   :  { %1126 = vst.msk [vmem:[%s2717_s3] sm:$0xff] %vm1125_vm7, %v1122_v13 }
 0x21e   :  { %v1117_v14 = vpop.xlane.xlu0 %1116 }
 0x21f   :  { %v1120_v15 = vpop.xlane.xlu1 %1119  ;;  %v1123_v16 = vmul.f32 0.033333335, %v1117_v14 }
 0x220   :  { %v1124_v17 = vmul.f32 0.033333335, %v1120_v15 }
 0x221   :  { %1127 = vst.msk [vmem:[%s2717_s3 + $0x8] sm:$0xff] %vm1125_vm7, %v1123_v16 }
 0x222   :  { %1128 = vst.msk [vmem:[%s2717_s3 + $0x10] sm:$0xff] %vm1125_vm7, %v1124_v17 }

</bundles_post_ra>
